<compile_context>
chip_gen: v6e
topology: v6e:2x2x1
jax: 0.10.0
libtpu: 0.0.40
codegen_flags: <defaults>
</compile_context>

<pallas_src>
import functools
import math

import jax
import jax.numpy as jnp
from jax.experimental import pallas as pl
from jax.experimental.pallas import tpu as pltpu


def _round_up(x, m):
    return ((x + m - 1) // m) * m


# ----------------------------------------------------------------------------
# Pallas kernel: n_layers of childless TreeLSTM cells + per-batch node mean.
# (The node-embedding Linear is folded into layer 0's weights at pack time.)
# ----------------------------------------------------------------------------
def tree_encoder_kernel(x_ref, w_g0_ref, b_g0_ref, w_rest_ref, b_rest_ref,
                        out_ref, *, n_rest, nodes, inv_nodes, matmul_dtype):
    Hp = out_ref.shape[-1]          # lane-padded hidden dim (multiple of 128)
    bt = out_ref.shape[0]           # batches handled by this grid step

    def cell(gates):
        # Childless TreeLSTM cell on f32 gate pre-activations.
        # (bf16 transcendentals on v6e/v7x would roughly double EUP throughput
        #  at large sizes; kept f32 here so the same kernel is valid on v5e.)
        i_gate = jax.nn.sigmoid(gates[:, 0:Hp])
        o_gate = jax.nn.sigmoid(gates[:, Hp:2 * Hp])
        c_tilde = jnp.tanh(gates[:, 2 * Hp:3 * Hp])
        return o_gate * jnp.tanh(i_gate * c_tilde)    # c = i*ct (no children)

    # Layer 0: embedding folded in -> (tile_M, F) @ (F, 3*Hp), f32 accumulate.
    gates = jnp.dot(x_ref[...], w_g0_ref[...],
                    preferred_element_type=jnp.float32) + b_g0_ref[...]
    h = cell(gates)                                   # (tile_M, Hp) f32

    # Remaining layers: one fused (i|o|c) matmul each, sliced at 128-lane
    # aligned offsets.
    for l in range(n_rest):
        gates = jnp.dot(h.astype(matmul_dtype), w_rest_ref[l],
                        preferred_element_type=jnp.float32) + b_rest_ref[l]
        h = cell(gates)

    # Mean over nodes: tile-local XLU sublane reduction (no HBM avg matrix,
    # no extra MXU pass).  tile_M = bt * nodes, reshape is layout-preserving
    # when nodes is a multiple of 8 (true for the shapes used here).
    h3 = h.reshape(bt, nodes, Hp)
    out_ref[...] = jnp.sum(h3, axis=1, keepdims=True) * inv_nodes


# ----------------------------------------------------------------------------
# Parameter packing: fuse gate weights, fold embedding into layer 0, fold
# zero-h U_* biases, pad to 128 lanes, cast matmul inputs to bf16.
# ----------------------------------------------------------------------------
def pack_params(params, matmul_dtype=jnp.bfloat16):
    F, H = params['w_emb'].shape
    L = params['wi'].shape[0]
    Hp = _round_up(H, 128)
    hi = jax.lax.Precision.HIGHEST

    def pad_gates(wi, wo, wc, bi, bo, bc, kdim):
        # Fused gate columns: [0:Hp) = i, [Hp:2Hp) = o, [2Hp:3Hp) = c.
        # Padded columns are zero, so padded lanes of every gate pre-activation
        # are exactly zero -> h_pad = sigmoid(0)*tanh(sigmoid(0)*tanh(0)) = 0.
        w = jnp.zeros((kdim, 3 * Hp), jnp.float32)
        w = w.at[:, 0:H].set(wi).at[:, Hp:Hp + H].set(wo).at[:, 2 * Hp:2 * Hp + H].set(wc)
        b = jnp.zeros((1, 3 * Hp), jnp.float32)
        b = b.at[:, 0:H].set(bi).at[:, Hp:Hp + H].set(bo).at[:, 2 * Hp:2 * Hp + H].set(bc)
        return w, b

    # --- layer 0: fold the embedding Linear in (exact algebra; always a win
    # here since F << 1.5*Hp; if F were >> Hp keep the embedding separate). ---
    w_g1, b_g1 = pad_gates(params['wi'][0], params['wo'][0], params['wc'][0],
                           params['bi'][0], params['bo'][0], params['bc'][0], H)
    w_emb = params['w_emb'].astype(jnp.float32)                   # (F, H)
    b_emb = params['b_emb'].astype(jnp.float32)                   # (1, H)
    w_g0 = jnp.dot(w_emb, w_g1[:H, :], precision=hi)              # (F, 3Hp)
    b_g0 = jnp.dot(b_emb, w_g1[:H, :], precision=hi) + b_g1       # (1, 3Hp)

    # --- layers 1..L-1: fused gate weights, rows padded H -> Hp with zeros ---
    w_rest_list, b_rest_list = [], []
    for l in range(1, L):
        w, b = pad_gates(params['wi'][l], params['wo'][l], params['wc'][l],
                         params['bi'][l], params['bo'][l], params['bc'][l], H)
        w_full = jnp.zeros((Hp, 3 * Hp), jnp.float32).at[:H, :].set(w)
        w_rest_list.append(w_full)
        b_rest_list.append(b)
    if w_rest_list:
        w_rest = jnp.stack(w_rest_list)                           # (L-1, Hp, 3Hp)
        b_rest = jnp.stack(b_rest_list)                           # (L-1, 1, 3Hp)
    else:                                                         # L == 1: dummies, never read
        w_rest = jnp.zeros((1, Hp, 3 * Hp), jnp.float32)
        b_rest = jnp.zeros((1, 1, 3 * Hp), jnp.float32)

    return {
        'w_g0': w_g0.astype(matmul_dtype),     # matmul inputs may be bf16
        'b_g0': b_g0,                          # biases stay f32
        'w_rest': w_rest.astype(matmul_dtype),
        'b_rest': b_rest,
        'Hp': Hp,
    }


def _pick_batch_tile(B, N, sublane):
    """Largest divisor of B with a moderate, sublane-aligned row tile."""
    cap = max(1, 512 // max(N, 1))
    candidates = [bt for bt in range(1, B + 1) if B % bt == 0 and bt <= cap]
    if not candidates:
        candidates = [1]
    aligned = [bt for bt in candidates if (bt * N) % sublane == 0]
    return max(aligned or candidates)


# ----------------------------------------------------------------------------
# Wrapper
# ----------------------------------------------------------------------------
def tree_encoder(tree_features, params, *, matmul_dtype=jnp.bfloat16,
                 batch_tile=None):
    B, N, F = tree_features.shape
    H = params['w_emb'].shape[1]
    L = params['wi'].shape[0]

    packed = pack_params(params, matmul_dtype)
    Hp = packed['Hp']
    Lr = max(L - 1, 0)
    itemsize = jnp.dtype(matmul_dtype).itemsize
    sublane = 8 if itemsize >= 4 else 16

    if batch_tile is None:
        batch_tile = _pick_batch_tile(B, N, sublane)
    assert B % batch_tile == 0, "batch_tile must divide batch size"
    tile_m = batch_tile * N
    grid = (B // batch_tile,)

    # Flatten (B, N) into one row dimension and feed the MXU bf16 directly.
    x2d = tree_features.reshape(B * N, F).astype(matmul_dtype)

    operands = (x2d, packed['w_g0'], packed['b_g0'],
                packed['w_rest'], packed['b_rest'])

    in_specs = [
        pl.BlockSpec((tile_m, F), lambda b: (b, 0)),              # row tile of x
        pl.BlockSpec(packed['w_g0'].shape, lambda b: (0, 0)),     # weights: full-array,
        pl.BlockSpec(packed['b_g0'].shape, lambda b: (0, 0)),     # constant index_map ->
        pl.BlockSpec(packed['w_rest'].shape, lambda b: (0, 0, 0)),  # resident across tiles
        pl.BlockSpec(packed['b_rest'].shape, lambda b: (0, 0, 0)),
    ]
    # 3-D output so the last two block dims equal the full dims (lane-dense,
    # unmasked stores for any batch_tile); reshaped to (B, H) in the wrapper.
    out_specs = pl.BlockSpec((batch_tile, 1, Hp), lambda b: (b, 0, 0))

    M = B * N
    flops = 2 * M * F * 3 * Hp + Lr * 2 * M * Hp * 3 * Hp + 2 * M * Hp
    transcendentals = 4 * L * M * Hp          # 2x sigmoid + 2x tanh per layer
    bytes_accessed = sum(int(a.size) * a.dtype.itemsize for a in operands) + B * Hp * 4
    cost = pl.CostEstimate(flops=int(flops), transcendentals=int(transcendentals),
                           bytes_accessed=int(bytes_accessed))

    # Explicit scoped-VMEM limit from actual residency (weights + double-
    # buffered x/out tiles + gate intermediates), clamped to v7x's 64 MiB.
    weight_bytes = sum(int(a.size) * a.dtype.itemsize for a in operands[1:])
    tile_bytes = (2 * tile_m * F * itemsize            # x tile, double-buffered
                  + 2 * batch_tile * Hp * 4            # out tile, double-buffered
                  + 4 * tile_m * 3 * Hp * 4)           # gates/h intermediates, margin
    vmem_limit = int(min(64 * 2**20, max(16 * 2**20, 2 * (weight_bytes + tile_bytes))))

    out3 = pl.pallas_call(
        functools.partial(tree_encoder_kernel, n_rest=Lr, nodes=N,
                          inv_nodes=1.0 / N, matmul_dtype=matmul_dtype),
        out_shape=jax.ShapeDtypeStruct((B, 1, Hp), jnp.float32),
        grid=grid,
        in_specs=in_specs,
        out_specs=out_specs,
        compiler_params=pltpu.CompilerParams(
            dimension_semantics=("parallel",),        # megacore / v7x 2-TC sharding
            vmem_limit_bytes=vmem_limit),
        cost_estimate=cost,
    )(*operands)

    return out3.reshape(B, Hp)[:, :H]


# ----------------------------------------------------------------------------
# Deterministic parameter construction (PyTorch nn.Linear-style init)
# ----------------------------------------------------------------------------
def _linear_init(key, in_dim, out_dim):
    kw, kb = jax.random.split(key)
    bound = 1.0 / math.sqrt(in_dim)
    # weight stored as (in, out) == PyTorch W^T, so y = x @ w + b
    w = jax.random.uniform(kw, (in_dim, out_dim), jnp.float32, -bound, bound)
    b = jax.random.uniform(kb, (out_dim,), jnp.float32, -bound, bound)
    return w, b


def init_tree_encoder_params(key, node_feature_dim, hidden_dim, n_layers=2):
    keys = jax.random.split(key, 1 + n_layers * 8)
    w_emb, b_emb = _linear_init(keys[0], node_feature_dim, hidden_dim)

    wi_l, wo_l, wc_l, bi_l, bo_l, bc_l = [], [], [], [], [], []
    k = 1
    for _ in range(n_layers):
        W_i, b_Wi = _linear_init(keys[k + 0], hidden_dim, hidden_dim)
        U_i, b_Ui = _linear_init(keys[k + 1], hidden_dim, hidden_dim)
        # W_f / U_f exist in the module but are unused when nodes have no
        # children (tree_structure=None path); keys burned for determinism.
        _W_f, _b_Wf = _linear_init(keys[k + 2], hidden_dim, hidden_dim)
        _U_f, _b_Uf = _linear_init(keys[k + 3], hidden_dim, hidden_dim)
        W_o, b_Wo = _linear_init(keys[k + 4], hidden_dim, hidden_dim)
        U_o, b_Uo = _linear_init(keys[k + 5], hidden_dim, hidden_dim)
        W_c, b_Wc = _linear_init(keys[k + 6], hidden_dim, hidden_dim)
        U_c, b_Uc = _linear_init(keys[k + 7], hidden_dim, hidden_dim)
        k += 8

        wi_l.append(W_i)
        wo_l.append(W_o)
        wc_l.append(W_c)
        # h_sum == 0  =>  U_*(h_sum) reduces to its bias; fold it in.
        bi_l.append((b_Wi + b_Ui)[None, :])
        bo_l.append((b_Wo + b_Uo)[None, :])
        bc_l.append((b_Wc + b_Uc)[None, :])

    return {
        'w_emb': w_emb,
        'b_emb': b_emb[None, :],                 # (1, H)
        'wi': jnp.stack(wi_l),                   # (L, H, H)
        'wo': jnp.stack(wo_l),
        'wc': jnp.stack(wc_l),
        'bi': jnp.stack(bi_l),                   # (L, 1, H)
        'bo': jnp.stack(bo_l),
        'bc': jnp.stack(bc_l),
    }


# ----------------------------------------------------------------------------
# Pure-JAX reference for sanity checking (f32, unfused, HIGHEST precision)
# ----------------------------------------------------------------------------
def tree_encoder_ref(x, p):
    hi = jax.lax.Precision.HIGHEST
    h = jnp.einsum('bnf,fh->bnh', x, p['w_emb'], precision=hi) + p['b_emb']
    for l in range(p['wi'].shape[0]):
        i = jax.nn.sigmoid(jnp.einsum('bnh,hk->bnk', h, p['wi'][l], precision=hi) + p['bi'][l])
        o = jax.nn.sigmoid(jnp.einsum('bnh,hk->bnk', h, p['wo'][l], precision=hi) + p['bo'][l])
        ct = jnp.tanh(jnp.einsum('bnh,hk->bnk', h, p['wc'][l], precision=hi) + p['bc'][l])
        h = o * jnp.tanh(i * ct)
    return jnp.mean(h, axis=1)


if __name__ == "__main__":
    B, N, F, H, L = 2, 8, 16, 32, 2   # batch, max_nodes, node_feature_dim, hidden, layers

    key = jax.random.PRNGKey(0)
    k_params, k_x = jax.random.split(key)
    params = init_tree_encoder_params(k_params, F, H, n_layers=L)
    x = jax.random.normal(k_x, (B, N, F), dtype=jnp.float32)

    ref = tree_encoder_ref(x, params)

    # f32 matmul path (single tile): tight check against the reference semantics.
    out_f32 = jax.block_until_ready(tree_encoder(x, params, matmul_dtype=jnp.float32))
    assert out_f32.shape == (B, H)
    assert jnp.allclose(out_f32, ref, atol=1e-3, rtol=1e-3), "f32 mismatch vs JAX reference"

    # f32 path with batch_tile=1: exercises the parallel grid (2 steps; both TCs on v7x).
    out_grid = jax.block_until_ready(
        tree_encoder(x, params, matmul_dtype=jnp.float32, batch_tile=1))
    assert jnp.allclose(out_grid, ref, atol=1e-3, rtol=1e-3), "gridded f32 mismatch"

    # Default bf16 matmul-input path (f32 accumulation + f32 gate math).
    out_bf16 = jax.block_until_ready(tree_encoder(x, params))
    assert out_bf16.shape == (B, H)
    assert jnp.allclose(out_bf16, ref, atol=5e-2, rtol=5e-2), "bf16 mismatch vs JAX reference"

    # TODO(synk): the recursive tree_structure path (data-dependent child
    # gather + forget gates over a Python dict) has no clean static-grid Pallas
    # equivalent; only the tree_structure=None path is implemented here.
    print("KERNEL_OK")
</pallas_src>

<mosaic_0001>
module attributes {stable_mosaic.version = 11 : i64} {
  func.func @tree_encoder_kernel(%arg0: i32, %arg1: memref<16x16xf32, #tpu.memory_space<vmem>>, %arg2: memref<16x384xf32, #tpu.memory_space<vmem>>, %arg3: memref<1x384xf32, #tpu.memory_space<vmem>>, %arg4: memref<1x128x384xf32, #tpu.memory_space<vmem>>, %arg5: memref<1x1x384xf32, #tpu.memory_space<vmem>>, %arg6: memref<2x1x128xf32, #tpu.memory_space<vmem>>) attributes {dimension_semantics = [#tpu.dimension_semantics<parallel>], iteration_bounds = array<i64: 1>, scalar_prefetch = 0 : i64, scratch_operands = 0 : i64, tpu.core_type = #tpu.core_type<tc>, window_params = [{transform_indices = @transform_0, window_bounds = array<i64: 16, 16>}, {pipeline_mode = #tpu.pipeline_mode<synchronous>, transform_indices = @transform_1, window_bounds = array<i64: 16, 384>}, {pipeline_mode = #tpu.pipeline_mode<synchronous>, transform_indices = @transform_2, window_bounds = array<i64: 1, 384>}, {pipeline_mode = #tpu.pipeline_mode<synchronous>, transform_indices = @transform_3, window_bounds = array<i64: 1, 128, 384>}, {pipeline_mode = #tpu.pipeline_mode<synchronous>, transform_indices = @transform_4, window_bounds = array<i64: 1, 1, 384>}, {transform_indices = @transform_5, window_bounds = array<i64: 2, 1, 128>}]} {
    %c0 = arith.constant 0 : index
    %c0_0 = arith.constant 0 : index
    %0 = vector.load %arg1[%c0, %c0_0] : memref<16x16xf32, #tpu.memory_space<vmem>>, vector<16x16xf32>
    %c0_1 = arith.constant 0 : index
    %c0_2 = arith.constant 0 : index
    %1 = vector.load %arg2[%c0_1, %c0_2] : memref<16x384xf32, #tpu.memory_space<vmem>>, vector<16x384xf32>
    %cst = arith.constant dense<0.000000e+00> : vector<16x384xf32>
    %2 = tpu.matmul %0, %1, %cst {dimension_numbers = #tpu.dot_dimension_numbers<[1], [0], [0], [1], [0, 0, 1, 1], [], []>} : vector<16x16xf32>, vector<16x384xf32>, vector<16x384xf32> -> vector<16x384xf32>
    %c0_3 = arith.constant 0 : index
    %c0_4 = arith.constant 0 : index
    %3 = vector.load %arg3[%c0_3, %c0_4] : memref<1x384xf32, #tpu.memory_space<vmem>>, vector<1x384xf32>
    %4 = vector.broadcast %3 : vector<1x384xf32> to vector<16x384xf32>
    %5 = arith.addf %2, %4 : vector<16x384xf32>
    %6 = vector.extract_strided_slice %5 {offsets = [0, 0], sizes = [16, 128], strides = [1, 1]} : vector<16x384xf32> to vector<16x128xf32>
    %7 = arith.negf %6 : vector<16x128xf32>
    %8 = math.exp %7 : vector<16x128xf32>
    %cst_5 = arith.constant 1.000000e+00 : f32
    %9 = vector.broadcast %cst_5 : f32 to vector<16x128xf32>
    %10 = arith.addf %9, %8 : vector<16x128xf32>
    %11 = arith.divf %9, %10 : vector<16x128xf32>
    %12 = vector.extract_strided_slice %5 {offsets = [0, 128], sizes = [16, 128], strides = [1, 1]} : vector<16x384xf32> to vector<16x128xf32>
    %13 = arith.negf %12 : vector<16x128xf32>
    %14 = math.exp %13 : vector<16x128xf32>
    %cst_6 = arith.constant 1.000000e+00 : f32
    %15 = vector.broadcast %cst_6 : f32 to vector<16x128xf32>
    %16 = arith.addf %15, %14 : vector<16x128xf32>
    %17 = arith.divf %15, %16 : vector<16x128xf32>
    %18 = vector.extract_strided_slice %5 {offsets = [0, 256], sizes = [16, 128], strides = [1, 1]} : vector<16x384xf32> to vector<16x128xf32>
    %19 = math.tanh %18 : vector<16x128xf32>
    %20 = arith.mulf %11, %19 : vector<16x128xf32>
    %21 = math.tanh %20 : vector<16x128xf32>
    %22 = arith.mulf %17, %21 : vector<16x128xf32>
    %c0_7 = arith.constant 0 : index
    %c0_8 = arith.constant 0 : index
    %c0_9 = arith.constant 0 : index
    %23 = vector.load %arg4[%c0_7, %c0_8, %c0_9] : memref<1x128x384xf32, #tpu.memory_space<vmem>>, vector<1x128x384xf32>
    %24 = vector.shape_cast %23 : vector<1x128x384xf32> to vector<128x384xf32>
    %cst_10 = arith.constant dense<0.000000e+00> : vector<16x384xf32>
    %25 = tpu.matmul %22, %24, %cst_10 {dimension_numbers = #tpu.dot_dimension_numbers<[1], [0], [0], [1], [0, 0, 1, 1], [], []>} : vector<16x128xf32>, vector<128x384xf32>, vector<16x384xf32> -> vector<16x384xf32>
    %c0_11 = arith.constant 0 : index
    %c0_12 = arith.constant 0 : index
    %c0_13 = arith.constant 0 : index
    %26 = vector.load %arg5[%c0_11, %c0_12, %c0_13] : memref<1x1x384xf32, #tpu.memory_space<vmem>>, vector<1x1x384xf32>
    %27 = vector.shape_cast %26 : vector<1x1x384xf32> to vector<1x384xf32>
    %28 = vector.broadcast %27 : vector<1x384xf32> to vector<16x384xf32>
    %29 = arith.addf %25, %28 : vector<16x384xf32>
    %30 = vector.extract_strided_slice %29 {offsets = [0, 0], sizes = [16, 128], strides = [1, 1]} : vector<16x384xf32> to vector<16x128xf32>
    %31 = arith.negf %30 : vector<16x128xf32>
    %32 = math.exp %31 : vector<16x128xf32>
    %cst_14 = arith.constant 1.000000e+00 : f32
    %33 = vector.broadcast %cst_14 : f32 to vector<16x128xf32>
    %34 = arith.addf %33, %32 : vector<16x128xf32>
    %35 = arith.divf %33, %34 : vector<16x128xf32>
    %36 = vector.extract_strided_slice %29 {offsets = [0, 128], sizes = [16, 128], strides = [1, 1]} : vector<16x384xf32> to vector<16x128xf32>
    %37 = arith.negf %36 : vector<16x128xf32>
    %38 = math.exp %37 : vector<16x128xf32>
    %cst_15 = arith.constant 1.000000e+00 : f32
    %39 = vector.broadcast %cst_15 : f32 to vector<16x128xf32>
    %40 = arith.addf %39, %38 : vector<16x128xf32>
    %41 = arith.divf %39, %40 : vector<16x128xf32>
    %42 = vector.extract_strided_slice %29 {offsets = [0, 256], sizes = [16, 128], strides = [1, 1]} : vector<16x384xf32> to vector<16x128xf32>
    %43 = math.tanh %42 : vector<16x128xf32>
    %44 = arith.mulf %35, %43 : vector<16x128xf32>
    %45 = math.tanh %44 : vector<16x128xf32>
    %46 = arith.mulf %41, %45 : vector<16x128xf32>
    %47 = vector.shape_cast %46 : vector<16x128xf32> to vector<2x8x128xf32>
    %cst_16 = arith.constant dense<0.000000e+00> : vector<2x128xf32>
    %48 = vector.multi_reduction <add>, %47, %cst_16 [1] : vector<2x8x128xf32> to vector<2x128xf32>
    %49 = vector.shape_cast %48 : vector<2x128xf32> to vector<2x1x128xf32>
    %cst_17 = arith.constant 1.250000e-01 : f32
    %50 = vector.broadcast %cst_17 : f32 to vector<2x1x128xf32>
    %51 = arith.mulf %49, %50 : vector<2x1x128xf32>
    %c0_18 = arith.constant 0 : index
    %c0_19 = arith.constant 0 : index
    %c0_20 = arith.constant 0 : index
    %52 = vector.load %arg6[%c0_18, %c0_19, %c0_20] : memref<2x1x128xf32, #tpu.memory_space<vmem>>, vector<2x1x128xf32>
    tpu.vector_store %arg6[%c0_18, %c0_19, %c0_20], %51 {strides = array<i32>} : memref<2x1x128xf32, #tpu.memory_space<vmem>>, vector<2x1x128xf32>,
    return
  }
  func.func @transform_0(%arg0: i32) -> (i32, i32) {
    %c0_i32 = arith.constant 0 : i32
    %c0_i32_0 = arith.constant 0 : i32
    return %arg0, %c0_i32 : i32, i32
  }
  func.func @transform_1(%arg0: i32) -> (i32, i32) {
    %c0_i32 = arith.constant 0 : i32
    %c0_i32_0 = arith.constant 0 : i32
    %c0_i32_1 = arith.constant 0 : i32
    return %c0_i32, %c0_i32_0 : i32, i32
  }
  func.func @transform_2(%arg0: i32) -> (i32, i32) {
    %c0_i32 = arith.constant 0 : i32
    %c0_i32_0 = arith.constant 0 : i32
    %c0_i32_1 = arith.constant 0 : i32
    return %c0_i32, %c0_i32_0 : i32, i32
  }
  func.func @transform_3(%arg0: i32) -> (i32, i32, i32) {
    %c0_i32 = arith.constant 0 : i32
    %c0_i32_0 = arith.constant 0 : i32
    %c0_i32_1 = arith.constant 0 : i32
    %c0_i32_2 = arith.constant 0 : i32
    return %c0_i32, %c0_i32_0, %c0_i32_1 : i32, i32, i32
  }
  func.func @transform_4(%arg0: i32) -> (i32, i32, i32) {
    %c0_i32 = arith.constant 0 : i32
    %c0_i32_0 = arith.constant 0 : i32
    %c0_i32_1 = arith.constant 0 : i32
    %c0_i32_2 = arith.constant 0 : i32
    return %c0_i32, %c0_i32_0, %c0_i32_1 : i32, i32, i32
  }
  func.func @transform_5(%arg0: i32) -> (i32, i32, i32) {
    %c0_i32 = arith.constant 0 : i32
    %c0_i32_0 = arith.constant 0 : i32
    %c0_i32_1 = arith.constant 0 : i32
    return %arg0, %c0_i32, %c0_i32_0 : i32, i32, i32
  }
}

</mosaic_0001>

<bundles_post_ra>
// kernel: tpu_custom_call.1
= control target key start
LH: loop header
LB: loop body
LE: loop exit
PB: predicated region body
PF: predicated region fallthrough
CT: control target
= control target key end

     0   :  { %10 = vsyncpa [#allocation3], 0  ;;  %s854_s0 = inlined_call_operand.hbm [shape: f32[16,16], index: 0, kind: input, shape index: {}]   ;;  %s855_s1 = inlined_call_operand.hbm [shape: f32[16,384], index: 1, kind: input, shape index: {}]   ;;  %s856_s2 = inlined_call_operand.vmem [shape: f32[1,384], index: 2, kind: input, shape index: {}]   ;;  %s857_s3 = inlined_call_operand.hbm [shape: f32[1,128,384], index: 3, kind: input, shape index: {}]   ;;  %s858_s4 = inlined_call_operand.vmem [shape: f32[1,1,384], index: 4, kind: input, shape index: {}]   ;;  %s859_s5 = inlined_call_operand.hbm [shape: f32[2,1,128], index: 5, kind: output, shape index: {}]  }
   0x1   :  { %11 = vsyncpa [#allocation6], 0 }
   0x2   :  { %12 = vsyncpa [#allocation4], 0  ;;  %s782_s18 = smov [#allocation5]  }
   0x3   :  { %s30_s19 = sshll.u32 %s782_s18, 4  ;;  %s31_s19 = int_to_ptr.vmem [resolvable:$true] %s30_s19 }
   0x4   :  { %s704_s20 = scalar_lea.vmem %s31_s19, 768  ;;  %p709_p1 = scmp.lt.s32.totalorder %s31_s19, %s31_s19 }
   0x5   :  { %p705_p0 = scmp.ne.s32.totalorder %s31_s19, %s704_s20  ;;  %p710_p2 = scmp.lt.s32.totalorder %s704_s20, %s704_s20 }
   0x7   :  { %p711_p3 = por %p710_p2, %p709_p1 }
   0x9   :  { %p712_p4 = pnand %p711_p3, %p705_p0 }
   0xb   :  { %715 = shalt.err (!%p712_p4)
}
   0xc   :  { %s783_s21 = smov 384   ;;  %s784_s22 = smov 24  }
   0xd   :  { %36 = dma.hbm_to_vmem [thread:$0]  %s855_s1, 768, %s31_s19, [#allocation6], %s783_s21, %s783_s21, %s784_s22  }
   0xe   :  { %s785_s25 = smov [#allocation2]  }
   0xf   :  { %s18_s26 = sshll.u32 %s785_s25, 4  ;;  %s19_s26 = int_to_ptr.vmem [resolvable:$true] %s18_s26 }
  0x10   :  { %s724_s27 = scalar_lea.vmem %s19_s26, 256  ;;  %p729_p6 = scmp.lt.s32.totalorder %s19_s26, %s19_s26 }
  0x11   :  { %p725_p5 = scmp.ne.s32.totalorder %s19_s26, %s724_s27  ;;  %p730_p7 = scmp.lt.s32.totalorder %s724_s27, %s724_s27 }
  0x13   :  { %p731_p8 = por %p730_p7, %p729_p6 }
  0x15   :  { %p732_p9 = pnand %p731_p8, %p725_p5 }
  0x17   :  { %735 = shalt.err (!%p732_p9)
}
  0x18   :  { %s786_s28 = smov 128   ;;  %s787_s29 = smov 8  }
  0x19   :  { %24 = dma.hbm_to_vmem [thread:$0]  %s854_s0, 256, %s19_s26, [#allocation3], %s786_s28, %s786_s28, %s787_s29  }
  0x1a   :  { %s788_s7 = smov [#allocation7]  }
  0x1b   :  { %s44_s8 = sshll.u32 %s788_s7, 4  ;;  %s45_s8 = int_to_ptr.vmem [resolvable:$true] %s44_s8 }
  0x1c   :  { %s744_s1 = scalar_lea.vmem %s45_s8, 6144  ;;  %p749_p11 = scmp.lt.s32.totalorder %s45_s8, %s45_s8 }
  0x1d   :  { %p745_p10 = scmp.ne.s32.totalorder %s45_s8, %s744_s1  ;;  %p750_p12 = scmp.lt.s32.totalorder %s744_s1, %s744_s1 }
  0x1f   :  { %p751_p13 = por %p750_p12, %p749_p11 }
  0x21   :  { %p752_p0 = pnand %p751_p13, %p745_p10 }
  0x23   :  { %755 = shalt.err (!%p752_p0)
}
  0x24   :  { %50 = dma.hbm_to_vmem [thread:$0]  %s857_s3, 6144, %s45_s8, [#allocation6], %s783_s21, %s783_s21, %s784_s22  }
  0x25   :  { %776 = dma.done.wait [#allocation3], 256  }
  0x26   :  { %777 = vsyncadd [#allocation3], 4294967040 }
  0x27   :  { %778 = dma.done.wait [#allocation6], 6912  }
  0x28   :  { %779 = vsyncadd [#allocation6], 4294960384  ;;  %v789_v0 = vmov 0.0   ;;  %v68_v1 = vld [vmem:[#allocation5 + $0x20] sm:$0xff]  ;;  %v67_v2 = vld [vmem:[#allocation5 + $0x18] sm:$0xff]  ;;  %vm87_vm0 = vcmask 130048   ;;  %v72_v57 = vlaneseq }
  0x29   :  { %158 = vmatprep.mubr.f32.mxu0 %v789_v0  ;;  %v65_v3 = vld [vmem:[#allocation5 + $0x8] sm:$0xff]  ;;  %122 = vmatprep.subr.mxu0 %v68_v1  ;;  %v64_v4 = vld [vmem:[#allocation5] sm:$0xff]  ;;  %v62_v5 = vld [vmem:[#allocation2] sm:$0xff] }
  0x2a   :  { %123 = vmatpush1.msra.mxu0 %v67_v2  ;;  %v69_v6 = vld [vmem:[#allocation5 + $0x28] sm:$0xff]  ;;  %v66_v7 = vld [vmem:[#allocation5 + $0x10] sm:$0xff]  ;;  %599 = vmatprep.mubr.msk.f32.mxu1 %vm87_vm0, %v62_v5  ;;  %v63_v8 = vld [vmem:[#allocation2 + $0x8] sm:$0xff]  ;;  %v835_v58 = vshrl.u32 %v72_v57, 7 }
  0x2b   :  { %124 = vmatprep.subr.mxu0 %v65_v3  ;;  %595 = vmatprep.subr.mxu1 %v69_v6  ;;  %v324_v9 = vld [vmem:[#allocation7 + $0x170] sm:$0xff]  ;;  %v323_v10 = vld [vmem:[#allocation7 + $0x168] sm:$0xff]  ;;  %v321_v11 = vld [vmem:[#allocation7 + $0x158] sm:$0xff] }
  0x2c   :  { %125 = vmatpush1.msra.mxu0 %v64_v4  ;;  %596 = vmatpush3.msra.mxu1 %v69_v6  ;;  %v320_v12 = vld [vmem:[#allocation7 + $0x150] sm:$0xff]  ;;  %v318_v13 = vld [vmem:[#allocation7 + $0x140] sm:$0xff]  ;;  %v325_v14 = vld [vmem:[#allocation7 + $0x178] sm:$0xff]  ;;  %v74_v59 = vsub.s32 0, %v835_v58  ;;  %v78_v63 = vsub.s32 1, %v835_v58 }
  0x2d   :  { %561 = vmatmul.mubr.msk.f32.vlgmr.msra.gmra.mxu0 %vm87_vm0, %v62_v5  ;;  %597 = vmatprep.subr.mxu1 %v66_v7  ;;  %v317_v15 = vld [vmem:[#allocation7 + $0x138] sm:$0xff]  ;;  %v315_v16 = vld [vmem:[#allocation7 + $0x128] sm:$0xff]  ;;  %v322_v17 = vld [vmem:[#allocation7 + $0x160] sm:$0xff] }
  0x2e   :  { %164 = vmatprep.mubr.f32.mxu0 %v789_v0  ;;  %598 = vmatpush3.msra.mxu1 %v66_v7  ;;  %v314_v18 = vld [vmem:[#allocation7 + $0x120] sm:$0xff]  ;;  %v312_v19 = vld [vmem:[#allocation7 + $0x110] sm:$0xff]  ;;  %v319_v20 = vld [vmem:[#allocation7 + $0x148] sm:$0xff] }
  0x2f   :  { %600 = vmatmul.mubr.msk.f32.vlgmr.msra.gmra.mxu1 %vm87_vm0, %v63_v8  ;;  %343 = vmatprep.subr.mxu0 %v324_v9  ;;  %v311_v21 = vld [vmem:[#allocation7 + $0x108] sm:$0xff]  ;;  %v309_v22 = vld [vmem:[#allocation7 + $0xf8] sm:$0xff]  ;;  %v316_v23 = vld [vmem:[#allocation7 + $0x130] sm:$0xff] }
  0x30   :  { %344 = vmatpush1.msra.mxu0 %v323_v10  ;;  %602 = vmatprep.subr.mxu1 %v325_v14  ;;  %v308_v24 = vld [vmem:[#allocation7 + $0xf0] sm:$0xff]  ;;  %v306_v25 = vld [vmem:[#allocation7 + $0xe0] sm:$0xff]  ;;  %v313_v26 = vld [vmem:[#allocation7 + $0x118] sm:$0xff] }
  0x31   :  { %562 = vmatmul.mubr.msk.f32.gmra.mxu0 %vm87_vm0, %v63_v8  ;;  %345 = vmatprep.subr.mxu0 %v321_v11  ;;  %v305_v27 = vld [vmem:[#allocation7 + $0xd8] sm:$0xff]  ;;  %v303_v28 = vld [vmem:[#allocation7 + $0xc8] sm:$0xff]  ;;  %v310_v29 = vld [vmem:[#allocation7 + $0x100] sm:$0xff]  ;;  %v82_v8 = vsub.s32 2, %v835_v58 }
  0x32   :  { %407 = vmatprep.mubr.f32.mxu0 %v789_v0  ;;  %346 = vmatpush1.msra.mxu0 %v320_v12  ;;  %v302_v30 = vld [vmem:[#allocation7 + $0xc0] sm:$0xff]  ;;  %v300_v31 = vld [vmem:[#allocation7 + $0xb0] sm:$0xff]  ;;  %v307_v32 = vld [vmem:[#allocation7 + $0xe8] sm:$0xff] }
  0x33   :  { %347 = vmatprep.subr.mxu0 %v318_v13  ;;  %603 = vmatpush3.msra.mxu1 %v325_v14  ;;  %v299_v33 = vld [vmem:[#allocation7 + $0xa8] sm:$0xff]  ;;  %v297_v34 = vld [vmem:[#allocation7 + $0x98] sm:$0xff]  ;;  %v304_v35 = vld [vmem:[#allocation7 + $0xd0] sm:$0xff] }
  0x34   :  { %348 = vmatpush1.msra.mxu0 %v317_v15  ;;  %604 = vmatprep.subr.mxu1 %v322_v17  ;;  %v296_v36 = vld [vmem:[#allocation7 + $0x90] sm:$0xff]  ;;  %v294_v37 = vld [vmem:[#allocation7 + $0x80] sm:$0xff]  ;;  %v301_v38 = vld [vmem:[#allocation7 + $0xb8] sm:$0xff] }
  0x35   :  { %349 = vmatprep.subr.mxu0 %v315_v16  ;;  %605 = vmatpush3.msra.mxu1 %v322_v17  ;;  %v293_v39 = vld [vmem:[#allocation7 + $0x78] sm:$0xff]  ;;  %v291_v40 = vld [vmem:[#allocation7 + $0x68] sm:$0xff]  ;;  %v298_v41 = vld [vmem:[#allocation7 + $0xa0] sm:$0xff] }
  0x36   :  { %350 = vmatpush1.msra.mxu0 %v314_v18  ;;  %606 = vmatprep.subr.mxu1 %v319_v20  ;;  %v290_v42 = vld [vmem:[#allocation7 + $0x60] sm:$0xff]  ;;  %v288_v43 = vld [vmem:[#allocation7 + $0x50] sm:$0xff]  ;;  %v295_v44 = vld [vmem:[#allocation7 + $0x88] sm:$0xff] }
  0x37   :  { %351 = vmatprep.subr.mxu0 %v312_v19  ;;  %607 = vmatpush3.msra.mxu1 %v319_v20  ;;  %v287_v45 = vld [vmem:[#allocation7 + $0x48] sm:$0xff]  ;;  %v285_v46 = vld [vmem:[#allocation7 + $0x38] sm:$0xff]  ;;  %v292_v47 = vld [vmem:[#allocation7 + $0x70] sm:$0xff] }
  0x38   :  { %352 = vmatpush1.msra.mxu0 %v311_v21  ;;  %608 = vmatprep.subr.mxu1 %v316_v23  ;;  %v284_v48 = vld [vmem:[#allocation7 + $0x30] sm:$0xff]  ;;  %v282_v49 = vld [vmem:[#allocation7 + $0x20] sm:$0xff]  ;;  %v289_v50 = vld [vmem:[#allocation7 + $0x58] sm:$0xff] }
  0x39   :  { %353 = vmatprep.subr.mxu0 %v309_v22  ;;  %609 = vmatpush3.msra.mxu1 %v316_v23  ;;  %v281_v51 = vld [vmem:[#allocation7 + $0x18] sm:$0xff]  ;;  %v279_v52 = vld [vmem:[#allocation7 + $0x8] sm:$0xff]  ;;  %v286_v53 = vld [vmem:[#allocation7 + $0x40] sm:$0xff] }
  0x3a   :  { %354 = vmatpush1.msra.mxu0 %v308_v24  ;;  %610 = vmatprep.subr.mxu1 %v313_v26  ;;  %v278_v54 = vld [vmem:[#allocation7] sm:$0xff]  ;;  %v283_v55 = vld [vmem:[#allocation7 + $0x28] sm:$0xff]  ;;  %v280_v56 = vld [vmem:[#allocation7 + $0x10] sm:$0xff] }
  0x3b   :  { %355 = vmatprep.subr.mxu0 %v306_v25  ;;  %611 = vmatpush3.msra.mxu1 %v313_v26  ;;  %v70_v60 = vld [vmem:[%s856_s2] sm:$0x7] }
  0x3c   :  { %356 = vmatpush1.msra.mxu0 %v305_v27  ;;  %612 = vmatprep.subr.mxu1 %v310_v29  ;;  %v75_v61 = vrot.slane %v70_v60, %v74_v59  ;;  %v79_v4 = vrot.slane %v70_v60, %v78_v63  ;;  %v83_v12 = vrot.slane %v70_v60, %v82_v8 }
  0x3d   :  { %357 = vmatprep.subr.mxu0 %v303_v28  ;;  %613 = vmatpush3.msra.mxu1 %v310_v29 }
  0x3e   :  { %358 = vmatpush1.msra.mxu0 %v302_v30  ;;  %614 = vmatprep.subr.mxu1 %v307_v32 }
  0x3f   :  { %359 = vmatprep.subr.mxu0 %v300_v31  ;;  %615 = vmatpush3.msra.mxu1 %v307_v32 }
  0x40   :  { %360 = vmatpush1.msra.mxu0 %v299_v33  ;;  %616 = vmatprep.subr.mxu1 %v304_v35 }
  0x41   :  { %361 = vmatprep.subr.mxu0 %v297_v34  ;;  %617 = vmatpush3.msra.mxu1 %v304_v35 }
  0x42   :  { %362 = vmatpush1.msra.mxu0 %v296_v36  ;;  %618 = vmatprep.subr.mxu1 %v301_v38 }
  0x43   :  { %363 = vmatprep.subr.mxu0 %v294_v37  ;;  %619 = vmatpush3.msra.mxu1 %v301_v38 }
  0x44   :  { %364 = vmatpush1.msra.mxu0 %v293_v39  ;;  %620 = vmatprep.subr.mxu1 %v298_v41  ;;  %v326_v39 = vld [vmem:[%s858_s4] sm:$0x7]  ;;  %s790_s4 = smov [#allocation8]  }
  0x45   :  { %365 = vmatprep.subr.mxu0 %v291_v40  ;;  %621 = vmatpush3.msra.mxu1 %v298_v41  ;;  %v331_v40 = vrot.slane %v326_v39, %v74_v59  ;;  %s548_s12 = sshll.u32 %s790_s4, 4  ;;  %s549_s12 = int_to_ptr.vmem [resolvable:$true] %s548_s12 }
  0x46   :  { %366 = vmatpush1.msra.mxu0 %v290_v42  ;;  %622 = vmatprep.subr.mxu1 %v295_v44  ;;  %s756_s13 = scalar_lea.vmem %s549_s12, 32  ;;  %p761_p2 = scmp.lt.s32.totalorder %s549_s12, %s549_s12 }
  0x47   :  { %367 = vmatprep.subr.mxu0 %v288_v43  ;;  %623 = vmatpush3.msra.mxu1 %v295_v44  ;;  %p757_p1 = scmp.ne.s32.totalorder %s549_s12, %s756_s13  ;;  %p762_p3 = scmp.lt.s32.totalorder %s756_s13, %s756_s13 }
  0x48   :  { %368 = vmatpush1.msra.mxu0 %v287_v45  ;;  %624 = vmatprep.subr.mxu1 %v292_v47  ;;  %v335_v45 = vrot.slane %v326_v39, %v78_v63 }
  0x49   :  { %369 = vmatprep.subr.mxu0 %v285_v46  ;;  %625 = vmatpush3.msra.mxu1 %v292_v47  ;;  %p763_p4 = por %p762_p3, %p761_p2 }
  0x4a   :  { %370 = vmatpush1.msra.mxu0 %v284_v48  ;;  %626 = vmatprep.subr.mxu1 %v289_v50 }
  0x4b   :  { %371 = vmatprep.subr.mxu0 %v282_v49  ;;  %627 = vmatpush3.msra.mxu1 %v289_v50  ;;  %p764_p5 = pnand %p763_p4, %p757_p1 }
  0x4c   :  { %372 = vmatpush1.msra.mxu0 %v281_v51  ;;  %628 = vmatprep.subr.mxu1 %v286_v53 }
  0x4d   :  { %373 = vmatprep.subr.mxu0 %v279_v52  ;;  %629 = vmatpush3.msra.mxu1 %v286_v53 }
  0x4e   :  { %374 = vmatpush1.msra.mxu0 %v278_v54  ;;  %630 = vmatprep.subr.mxu1 %v283_v55  ;;  %v339_v54 = vrot.slane %v326_v39, %v82_v8 }
  0x4f   :  { %631 = vmatpush3.msra.mxu1 %v283_v55 }
  0x50   :  { %632 = vmatprep.subr.mxu1 %v280_v56 }
  0x51   :  { %633 = vmatpush3.msra.mxu1 %v280_v56 }
  0xed   :  { %v160_v62 = vpop.f32.mrf.mxu0 }
  0xee   :  { %v161_v1 = vadd.f32 %v160_v62, %v75_v61 }
  0xef   :  { %v162_v2 = vpop.f32.mrf.mxu0  ;;  %v601_v10 = vpop.f32.mrf.mxu1 }
  0xf0   :  { %v565_v3 = vmul.f32 -1.442695, %v161_v1  ;;  %v163_v9 = vadd.f32 %v162_v2, %v79_v4  ;;  %v243_v20 = vadd.f32 %v601_v10, %v83_v12 }
  0xf1   :  { %v166_v5 = vpop.f32.mrf.mxu0  ;;  %v237_v15 = vpop.f32.mrf.mxu1 }
  0xf2   :  { %648 = vpow2.f32 %v565_v3  ;;  %v167_v6 = vadd.f32 %v166_v5, %v75_v61  ;;  %v567_v13 = vmul.f32 -1.442695, %v163_v9  ;;  %v238_v16 = vadd.f32 %v237_v15, %v83_v12 }
  0xf3   :  { %v168_v11 = vpop.f32.mrf.mxu0 }
  0xf4   :  { %v566_v7 = vmul.f32 -1.442695, %v167_v6  ;;  %v169_v14 = vadd.f32 %v168_v11, %v79_v4 }
  0xf6   :  { %650 = vpow2.f32 %v566_v7  ;;  %v568_v17 = vmul.f32 -1.442695, %v169_v14 }
  0xf7   :  { %652 = vpow2.f32 %v567_v13 }
  0xf8   :  { %654 = vtanh.f32 %v238_v16 }
  0xf9   :  { %656 = vpow2.f32 %v568_v17 }
  0xff   :  { %v649_v18 = vpop.eup %648 }
 0x100   :  { %v252_v19 = vadd.f32 1.0, %v649_v18 }
 0x102   :  { %658 = vrcp.f32 %v252_v19 }
 0x103   :  { %v651_v21 = vpop.eup %650  ;;  %660 = vtanh.f32 %v243_v20 }
 0x104   :  { %v253_v22 = vadd.f32 1.0, %v651_v21  ;;  %v653_v23 = vpop.eup %652 }
 0x105   :  { %v655_v24 = vpop.eup %654  ;;  %v264_v25 = vadd.f32 1.0, %v653_v23 }
 0x106   :  { %662 = vrcp.f32 %v253_v22  ;;  %v657_v26 = vpop.eup %656 }
 0x107   :  { %664 = vrcp.f32 %v264_v25  ;;  %v265_v29 = vadd.f32 1.0, %v657_v26 }
 0x10f   :  { %v659_v27 = vpop.eup %658 }
 0x110   :  { %v272_v28 = vmul.f32 %v659_v27, %v655_v24  ;;  %v661_v30 = vpop.eup %660 }
 0x112   :  { %666 = vtanh.f32 %v272_v28 }
 0x113   :  { %v663_v31 = vpop.eup %662  ;;  %668 = vrcp.f32 %v265_v29 }
 0x114   :  { %v273_v32 = vmul.f32 %v663_v31, %v661_v30  ;;  %v665_v33 = vpop.eup %664 }
 0x116   :  { %670 = vtanh.f32 %v273_v32 }
 0x11f   :  { %v667_v34 = vpop.eup %666 }
 0x120   :  { %v276_v35 = vmul.f32 %v667_v34, %v665_v33  ;;  %v669_v36 = vpop.eup %668 }
 0x122   :  { %408 = vmatmul.mubr.f32.vlgmr.msra.gmra.mxu0 %v276_v35  ;;  %634 = vmatprep.mubr.f32.mxu1 %v276_v35 }
 0x123   :  { %v671_v37 = vpop.eup %670  ;;  %413 = vmatprep.mubr.f32.mxu0 %v789_v0 }
 0x124   :  { %v277_v38 = vmul.f32 %v671_v37, %v669_v36 }
 0x126   :  { %414 = vmatmul.mubr.f32.gmra.mxu0 %v277_v38  ;;  %635 = vmatmul.mubr.f32.vlgmr.msra.gmra.mxu1 %v277_v38 }
 0x1e2   :  { %v409_v41 = vpop.f32.mrf.mxu0 }
 0x1e3   :  { %v410_v42 = vadd.f32 %v409_v41, %v331_v40 }
 0x1e4   :  { %v411_v43 = vpop.f32.mrf.mxu0 }
 0x1e5   :  { %v569_v44 = vmul.f32 -1.442695, %v410_v42  ;;  %v412_v49 = vadd.f32 %v411_v43, %v335_v45 }
 0x1e6   :  { %v415_v46 = vpop.f32.mrf.mxu0  ;;  %v636_v50 = vpop.f32.mrf.mxu1 }
 0x1e7   :  { %672 = vpow2.f32 %v569_v44  ;;  %v416_v47 = vadd.f32 %v415_v46, %v331_v40  ;;  %v571_v51 = vmul.f32 -1.442695, %v412_v49  ;;  %v492_v60 = vadd.f32 %v636_v50, %v339_v54 }
 0x1e8   :  { %v417_v0 = vpop.f32.mrf.mxu0  ;;  %v486_v53 = vpop.f32.mrf.mxu1 }
 0x1e9   :  { %v570_v48 = vmul.f32 -1.442695, %v416_v47  ;;  %v418_v52 = vadd.f32 %v417_v0, %v335_v45  ;;  %v487_v55 = vadd.f32 %v486_v53, %v339_v54 }
 0x1eb   :  { %674 = vpow2.f32 %v570_v48  ;;  %v572_v56 = vmul.f32 -1.442695, %v418_v52 }
 0x1ec   :  { %676 = vpow2.f32 %v571_v51 }
 0x1ed   :  { %678 = vtanh.f32 %v487_v55 }
 0x1ee   :  { %680 = vpow2.f32 %v572_v56 }
 0x1f4   :  { %v673_v57 = vpop.eup %672 }
 0x1f5   :  { %v501_v59 = vadd.f32 1.0, %v673_v57 }
 0x1f7   :  { %682 = vrcp.f32 %v501_v59 }
 0x1f8   :  { %v675_v61 = vpop.eup %674  ;;  %684 = vtanh.f32 %v492_v60 }
 0x1f9   :  { %v502_v62 = vadd.f32 1.0, %v675_v61  ;;  %v677_v63 = vpop.eup %676 }
 0x1fa   :  { %v679_v1 = vpop.eup %678  ;;  %v513_v2 = vadd.f32 1.0, %v677_v63 }
 0x1fb   :  { %686 = vrcp.f32 %v502_v62  ;;  %v681_v3 = vpop.eup %680 }
 0x1fc   :  { %688 = vrcp.f32 %v513_v2  ;;  %v514_v5 = vadd.f32 1.0, %v681_v3 }
 0x204   :  { %v683_v4 = vpop.eup %682 }
 0x205   :  { %v521_v58 = vmul.f32 %v683_v4, %v679_v1  ;;  %v685_v6 = vpop.eup %684 }
 0x207   :  { %690 = vtanh.f32 %v521_v58 }
 0x208   :  { %v687_v7 = vpop.eup %686  ;;  %692 = vrcp.f32 %v514_v5 }
 0x209   :  { %v522_v8 = vmul.f32 %v687_v7, %v685_v6  ;;  %v689_v9 = vpop.eup %688 }
 0x20b   :  { %694 = vtanh.f32 %v522_v8 }
 0x214   :  { %v691_v10 = vpop.eup %690 }
 0x215   :  { %v525_v11 = vmul.f32 %v691_v10, %v689_v9  ;;  %v693_v12 = vpop.eup %692 }
 0x217   :  { %v527_v13 = vrot.slane %v525_v11, 4 }
 0x218   :  { %v695_v14 = vpop.eup %694 }
 0x219   :  { %v526_v15 = vmul.f32 %v695_v14, %v693_v12  ;;  %v528_v16 = vadd.f32 %v527_v13, %v525_v11 }
 0x21b   :  { %v529_v17 = vrot.slane %v528_v16, 2  ;;  %v533_v18 = vrot.slane %v526_v15, 4 }
 0x21d   :  { %v530_v19 = vadd.f32 %v529_v17, %v528_v16  ;;  %v534_v20 = vadd.f32 %v533_v18, %v526_v15 }
 0x21f   :  { %v531_v21 = vrot.slane %v530_v19, 1  ;;  %v535_v22 = vrot.slane %v534_v20, 2 }
 0x221   :  { %v532_v23 = vadd.f32 %v531_v21, %v530_v19  ;;  %v536_v24 = vadd.f32 %v535_v22, %v534_v20 }
 0x223   :  { %v537_v25 = vrot.slane %v536_v24, 1  ;;  %v539_v26 = vmul.f32 0.125, %v532_v23 }
 0x225   :  { %v538_v27 = vadd.f32 %v537_v25, %v536_v24  ;;  %541 = vst [vmem:[#allocation8] sm:$0x1] %v539_v26 }
 0x227   :  { %v540_v28 = vmul.f32 0.125, %v538_v27 }
 0x229   :  { %542 = vst [vmem:[#allocation8 + $0x1] sm:$0x1] %v540_v28 }
 0x22a   :  { %767 = shalt.err (!%p764_p5)
}
 0x22b   :  { %s791_s14 = smov 16   ;;  %s792_s15 = smov 1  }
 0x22c   :  { %554 = dma.vmem_to_hbm [thread:$0]  %s549_s12, 32, %s859_s5, [#allocation4], %s791_s14, %s791_s14, %s792_s15  }
 0x22d   :  { %780 = dma.done.wait [#allocation4], 32  }
 0x22e   :  { %781 = vsyncadd [#allocation4], 4294967264 }
 0x22f   :  { %558 = vsyncpa [#allocation3], 1 }
 0x230   :  { %559 = vsyncpa [#allocation6], 1 }
 0x231   :  { %560 = vsyncpa [#allocation4], 1 }

</bundles_post_ra>
